<compile_context>
chip_gen: v7x
topology: tpu7x:2x2x1
jax: 0.10.0
libtpu: 0.0.40
codegen_flags: <defaults>
</compile_context>

<pallas_src>
import jax
import jax.numpy as jnp
from jax.experimental import pallas as pl
from jax.experimental.pallas import tpu as pltpu


def mog_rgb_kernel(noise_ref, eeg_ref, params_ref, w_ref, out_ref):
    # Resident parameter block: row 0 = std, row 1 = mean, row 2 = bias
    # (all lane-tiled to the folded width).
    std = params_ref[0:1, :]
    mean = params_ref[1:2, :]
    bias = params_ref[2:3, :]
    # Linear on folded rows: (tb, F*fold) @ block-diag W^T (F*fold, N*fold) + bias.
    inter = jnp.dot(eeg_ref[...], w_ref[...],
                    preferred_element_type=jnp.float32) + bias
    # MoG reparameterization + gating, elementwise on the VPU (lane-dense).
    gauss = noise_ref[...] * std + mean
    out_ref[...] = (gauss * inter).astype(out_ref.dtype)


def _round_up(x, m):
    return (x + m - 1) // m * m


def mog_rgb_forward(noise, eeg_features, std, mean, weight_t, bias,
                    *, block_b=8192, fold=None):
    """noise: (B, N), eeg_features: (B, F), std/mean/bias: (N,), weight_t: (F, N) = W^T."""
    B, N = noise.shape
    F = eeg_features.shape[1]

    # Fold enough batch rows into lanes to reach (at least) the 128-lane width.
    if fold is None:
        fold = max(1, -(-128 // N))          # cdiv(128, N)
    NL = N * fold                            # folded output/noise width (128 for N=32)
    FL = F * fold                            # folded eeg width (256 for F=64)

    # ---- tile / padding selection (minimal padding, even grid for v7x) ----
    Bf = pl.cdiv(B, fold)                    # folded rows needed
    tb_max = max(8, (max(block_b, fold) // fold) // 8 * 8)
    n_tiles = pl.cdiv(Bf, tb_max)
    if n_tiles % 2 == 1 and Bf > 8:          # keep grid even so both v7x TCs get work
        n_tiles += 1
    tb = _round_up(pl.cdiv(Bf, n_tiles), 8)  # folded rows per grid step (sublane-aligned)
    bf_pad = n_tiles * tb
    b_pad = bf_pad * fold
    if b_pad != B:
        pad = b_pad - B
        noise = jnp.pad(noise, ((0, pad), (0, 0)))
        eeg_features = jnp.pad(eeg_features, ((0, pad), (0, 0)))

    # ---- lane-folding (all free reshapes / tiny host-side prep) ----
    noise_f = noise.reshape(bf_pad, NL)
    eeg_f = eeg_features.reshape(bf_pad, FL)
    params = jnp.stack([jnp.tile(std, fold),
                        jnp.tile(mean, fold),
                        jnp.tile(bias, fold)], axis=0)            # (3, NL), resident
    w_f = jnp.kron(jnp.eye(fold, dtype=weight_t.dtype), weight_t)  # (FL, NL) block-diag

    # Memory-bound: bytes_accessed dwarfs flops; tell XLA so it schedules
    # neighbors around the DMA stream rather than the (tiny) matmul.
    flops = 2 * bf_pad * FL * NL + 3 * bf_pad * NL
    bytes_accessed = 4 * (bf_pad * (2 * NL + FL) + FL * NL + 3 * NL)

    out_f = pl.pallas_call(
        mog_rgb_kernel,
        out_shape=jax.ShapeDtypeStruct((bf_pad, NL), noise.dtype),
        grid_spec=pltpu.PrefetchScalarGridSpec(
            num_scalar_prefetch=0,
            grid=(n_tiles,),
            in_specs=[
                pl.BlockSpec((tb, NL), lambda i: (i, 0)),   # noise  (streamed, lane-dense)
                pl.BlockSpec((tb, FL), lambda i: (i, 0)),   # eeg    (streamed, lane-dense)
                pl.BlockSpec((3, NL), lambda i: (0, 0)),    # std/mean/bias (resident)
                pl.BlockSpec((FL, NL), lambda i: (0, 0)),   # block-diag W^T (resident)
            ],
            out_specs=pl.BlockSpec((tb, NL), lambda i: (i, 0)),
        ),
        compiler_params=pltpu.CompilerParams(
            dimension_semantics=("parallel",),   # shard batch tiles across TCs (v7x)
        ),
        cost_estimate=pl.CostEstimate(
            flops=flops, transcendentals=0, bytes_accessed=bytes_accessed),
    )(noise_f, eeg_f, params, w_f)

    out = out_f.reshape(b_pad, N)
    return out[:B] if b_pad != B else out


def reference_forward(noise, eeg_features, std, mean, weight_t, bias):
    inter = eeg_features @ weight_t + bias
    return (noise * std + mean) * inter


if __name__ == "__main__":
    key = jax.random.PRNGKey(0)
    B, noise_dim, features_dim = 2, 32, 64
    k_noise, k_eeg, k_std, k_mean, k_w, k_b = jax.random.split(key, 6)

    noise = jax.random.normal(k_noise, (B, noise_dim), dtype=jnp.float32)
    eeg_features = jax.random.normal(k_eeg, (B, features_dim), dtype=jnp.float32)

    # Parameter init mirroring the PyTorch module (deterministic, in-script).
    std = jax.random.uniform(k_std, (noise_dim,), minval=-0.2, maxval=0.2)
    mean = jax.random.uniform(k_mean, (noise_dim,), minval=-1.0, maxval=1.0)
    # nn.Linear default init: U(-1/sqrt(fan_in), 1/sqrt(fan_in))
    bound = 1.0 / (features_dim ** 0.5)
    weight_t = jax.random.uniform(
        k_w, (features_dim, noise_dim), minval=-bound, maxval=bound)  # W^T
    bias = jax.random.uniform(k_b, (noise_dim,), minval=-bound, maxval=bound)

    out = mog_rgb_forward(noise, eeg_features, std, mean, weight_t, bias)
    jax.block_until_ready(out)

    ref = reference_forward(noise, eeg_features, std, mean, weight_t, bias)
    assert out.shape == (B, noise_dim)
    assert jnp.allclose(out, ref, atol=1e-5, rtol=1e-5)

    # Exercise the multi-tile, lane-folded, padded path (B not a multiple of
    # fold or tile size; small block_b forces an even multi-step grid).
    B2 = 300
    k_n2, k_e2 = jax.random.split(jax.random.PRNGKey(1), 2)
    noise2 = jax.random.normal(k_n2, (B2, noise_dim), dtype=jnp.float32)
    eeg2 = jax.random.normal(k_e2, (B2, features_dim), dtype=jnp.float32)
    out2 = mog_rgb_forward(noise2, eeg2, std, mean, weight_t, bias, block_b=128)
    jax.block_until_ready(out2)
    ref2 = reference_forward(noise2, eeg2, std, mean, weight_t, bias)
    assert out2.shape == (B2, noise_dim)
    assert jnp.allclose(out2, ref2, atol=1e-5, rtol=1e-5)

    print("KERNEL_OK")
</pallas_src>

<mosaic_0001>
module attributes {stable_mosaic.version = 11 : i64} {
  func.func @mog_rgb_kernel(%arg0: i32, %arg1: memref<8x128xf32, #tpu.memory_space<vmem>>, %arg2: memref<8x256xf32, #tpu.memory_space<vmem>>, %arg3: memref<3x128xf32, #tpu.memory_space<vmem>>, %arg4: memref<256x128xf32, #tpu.memory_space<vmem>>, %arg5: memref<8x128xf32, #tpu.memory_space<vmem>>) attributes {dimension_semantics = [#tpu.dimension_semantics<parallel>], iteration_bounds = array<i64: 1>, scalar_prefetch = 0 : i64, scratch_operands = 0 : i64, tpu.core_type = #tpu.core_type<tc>, window_params = [{transform_indices = @transform_0, window_bounds = array<i64: 8, 128>}, {transform_indices = @transform_1, window_bounds = array<i64: 8, 256>}, {pipeline_mode = #tpu.pipeline_mode<synchronous>, transform_indices = @transform_2, window_bounds = array<i64: 3, 128>}, {pipeline_mode = #tpu.pipeline_mode<synchronous>, transform_indices = @transform_3, window_bounds = array<i64: 256, 128>}, {transform_indices = @transform_4, window_bounds = array<i64: 8, 128>}]} {
    %c0 = arith.constant 0 : index
    %c0_0 = arith.constant 0 : index
    %0 = vector.load %arg3[%c0, %c0_0] : memref<3x128xf32, #tpu.memory_space<vmem>>, vector<1x128xf32>
    %c1 = arith.constant 1 : index
    %c0_1 = arith.constant 0 : index
    %1 = vector.load %arg3[%c1, %c0_1] : memref<3x128xf32, #tpu.memory_space<vmem>>, vector<1x128xf32>
    %c2 = arith.constant 2 : index
    %c0_2 = arith.constant 0 : index
    %2 = vector.load %arg3[%c2, %c0_2] : memref<3x128xf32, #tpu.memory_space<vmem>>, vector<1x128xf32>
    %c0_3 = arith.constant 0 : index
    %c0_4 = arith.constant 0 : index
    %3 = vector.load %arg2[%c0_3, %c0_4] : memref<8x256xf32, #tpu.memory_space<vmem>>, vector<8x256xf32>
    %c0_5 = arith.constant 0 : index
    %c0_6 = arith.constant 0 : index
    %4 = vector.load %arg4[%c0_5, %c0_6] : memref<256x128xf32, #tpu.memory_space<vmem>>, vector<256x128xf32>
    %cst = arith.constant dense<0.000000e+00> : vector<8x128xf32>
    %5 = tpu.matmul %3, %4, %cst {dimension_numbers = #tpu.dot_dimension_numbers<[1], [0], [0], [1], [0, 0, 1, 1], [], []>} : vector<8x256xf32>, vector<256x128xf32>, vector<8x128xf32> -> vector<8x128xf32>
    %6 = vector.broadcast %2 : vector<1x128xf32> to vector<8x128xf32>
    %7 = arith.addf %5, %6 : vector<8x128xf32>
    %c0_7 = arith.constant 0 : index
    %c0_8 = arith.constant 0 : index
    %8 = vector.load %arg1[%c0_7, %c0_8] : memref<8x128xf32, #tpu.memory_space<vmem>>, vector<8x128xf32>
    %9 = vector.broadcast %0 : vector<1x128xf32> to vector<8x128xf32>
    %10 = arith.mulf %8, %9 : vector<8x128xf32>
    %11 = vector.broadcast %1 : vector<1x128xf32> to vector<8x128xf32>
    %12 = arith.addf %10, %11 : vector<8x128xf32>
    %13 = arith.mulf %12, %7 : vector<8x128xf32>
    %c0_9 = arith.constant 0 : index
    %c0_10 = arith.constant 0 : index
    %14 = vector.load %arg5[%c0_9, %c0_10] : memref<8x128xf32, #tpu.memory_space<vmem>>, vector<8x128xf32>
    tpu.vector_store %arg5[%c0_9, %c0_10], %13 {strides = array<i32>} : memref<8x128xf32, #tpu.memory_space<vmem>>, vector<8x128xf32>,
    return
  }
  func.func @transform_0(%arg0: i32) -> (i32, i32) {
    %c0_i32 = arith.constant 0 : i32
    %c0_i32_0 = arith.constant 0 : i32
    return %arg0, %c0_i32 : i32, i32
  }
  func.func @transform_1(%arg0: i32) -> (i32, i32) {
    %c0_i32 = arith.constant 0 : i32
    %c0_i32_0 = arith.constant 0 : i32
    return %arg0, %c0_i32 : i32, i32
  }
  func.func @transform_2(%arg0: i32) -> (i32, i32) {
    %c0_i32 = arith.constant 0 : i32
    %c0_i32_0 = arith.constant 0 : i32
    %c0_i32_1 = arith.constant 0 : i32
    return %c0_i32, %c0_i32_0 : i32, i32
  }
  func.func @transform_3(%arg0: i32) -> (i32, i32) {
    %c0_i32 = arith.constant 0 : i32
    %c0_i32_0 = arith.constant 0 : i32
    %c0_i32_1 = arith.constant 0 : i32
    return %c0_i32, %c0_i32_0 : i32, i32
  }
  func.func @transform_4(%arg0: i32) -> (i32, i32) {
    %c0_i32 = arith.constant 0 : i32
    %c0_i32_0 = arith.constant 0 : i32
    return %arg0, %c0_i32 : i32, i32
  }
}

</mosaic_0001>

<bundles_post_ra>
// kernel: tpu_custom_call.1
= control target key start
LH: loop header
LB: loop body
LE: loop exit
PB: predicated region body
PF: predicated region fallthrough
CT: control target
= control target key end

     0   :  { %9 = vsyncpa [#allocation3], 0  ;;  %s453_s0 = inlined_call_operand.hbm [shape: f32[8,128], index: 0, kind: input, shape index: {}]   ;;  %s454_s1 = inlined_call_operand.hbm [shape: f32[8,256], index: 1, kind: input, shape index: {}]   ;;  %s455_s2 = inlined_call_operand.vmem [shape: f32[3,128], index: 2, kind: input, shape index: {}]   ;;  %s456_s3 = inlined_call_operand.hbm [shape: f32[256,128], index: 3, kind: input, shape index: {}]   ;;  %s457_s4 = inlined_call_operand.hbm [shape: f32[8,128], index: 4, kind: output, shape index: {}]  }
   0x1   :  { %10 = vsyncpa [#allocation6], 0 }
   0x2   :  { %11 = vsyncpa [#allocation4], 0  ;;  %s365_s15 = smov [#allocation5]   ;;  %s366_s17 = smov [#allocation2]  }
   0x3   :  { %s28_s16 = sshll.u32 %s365_s15, 4  ;;  %s18_s18 = sshll.u32 %s366_s17, 4  ;;  %s29_s16 = int_to_ptr.vmem [resolvable:$true] %s28_s16  ;;  %s19_s18 = int_to_ptr.vmem [resolvable:$true] %s18_s18 }
   0x4   :  { %s271_s21 = scalar_lea.hbm %s454_s1, 256 }
   0x5   :  { %p272_p0 = scmp.ne.s32.totalorder %s454_s1, %s271_s21  ;;  %p275_p1 = scmp.lt.u32.totalorder %s271_s21, %s454_s1 }
   0x7   :  { %p277_p2 = pnand %p275_p1, %p272_p0 }
   0x9   :  { %280 = shalt.err (!%p277_p2)
}
   0xa   :  { %s281_s26 = scalar_lea.vmem %s29_s16, 256  ;;  %p286_p4 = scmp.lt.s32.totalorder %s29_s16, %s29_s16 }
   0xb   :  { %p282_p3 = scmp.ne.s32.totalorder %s29_s16, %s281_s26  ;;  %p287_p5 = scmp.lt.s32.totalorder %s281_s26, %s281_s26 }
   0xd   :  { %p288_p6 = por %p287_p5, %p286_p4 }
   0xf   :  { %p289_p7 = pnand %p288_p6, %p282_p3 }
  0x11   :  { %292 = shalt.err (!%p289_p7)
}
  0x12   :  { %31 = dma.hbm_to_vmem [thread:$0]  %s454_s1, 256, %s29_s16, [#allocation6]  }
  0x13   :  { %s293_s5 = scalar_lea.hbm %s453_s0, 128 }
  0x14   :  { %p294_p8 = scmp.ne.s32.totalorder %s453_s0, %s293_s5  ;;  %p297_p9 = scmp.lt.u32.totalorder %s293_s5, %s453_s0 }
  0x16   :  { %p299_p10 = pnand %p297_p9, %p294_p8 }
  0x18   :  { %302 = shalt.err (!%p299_p10)
}
  0x19   :  { %s303_s10 = scalar_lea.vmem %s19_s18, 128  ;;  %p308_p12 = scmp.lt.s32.totalorder %s19_s18, %s19_s18 }
  0x1a   :  { %p304_p11 = scmp.ne.s32.totalorder %s19_s18, %s303_s10  ;;  %p309_p13 = scmp.lt.s32.totalorder %s303_s10, %s303_s10 }
  0x1c   :  { %p310_p0 = por %p309_p13, %p308_p12 }
  0x1e   :  { %p311_p1 = pnand %p310_p0, %p304_p11 }
  0x20   :  { %314 = shalt.err (!%p311_p1)
}
  0x21   :  { %21 = dma.hbm_to_vmem [thread:$0]  %s453_s0, 128, %s19_s18, [#allocation3]  }
  0x22   :  { %s367_s12 = smov [#allocation7]   ;;  %s315_s16 = scalar_lea.hbm %s456_s3, 4096 }
  0x23   :  { %s39_s13 = sshll.u32 %s367_s12, 4  ;;  %p316_p2 = scmp.ne.s32.totalorder %s456_s3, %s315_s16  ;;  %s40_s13 = int_to_ptr.vmem [resolvable:$true] %s39_s13 }
  0x24   :  { %p319_p3 = scmp.lt.u32.totalorder %s315_s16, %s456_s3 }
  0x26   :  { %p321_p4 = pnand %p319_p3, %p316_p2 }
  0x28   :  { %324 = shalt.err (!%p321_p4)
}
  0x29   :  { %s325_s22 = scalar_lea.vmem %s40_s13, 4096  ;;  %p330_p6 = scmp.lt.s32.totalorder %s40_s13, %s40_s13 }
  0x2a   :  { %p326_p5 = scmp.ne.s32.totalorder %s40_s13, %s325_s22  ;;  %p331_p7 = scmp.lt.s32.totalorder %s325_s22, %s325_s22 }
  0x2c   :  { %p332_p8 = por %p331_p7, %p330_p6 }
  0x2e   :  { %p333_p9 = pnand %p332_p8, %p326_p5 }
  0x30   :  { %336 = shalt.err (!%p333_p9)
}
  0x31   :  { %s368_s0 = smov 128   ;;  %s369_s18 = smov 8  }
  0x32   :  { %45 = dma.hbm_to_vmem [thread:$0]  %s456_s3, 4096, %s40_s13, [#allocation6], %s368_s0, %s368_s0, %s369_s18  }
  0x33   :  { %359 = dma.done.wait [#allocation3], 128  }
  0x34   :  { %360 = vsyncadd [#allocation3], 4294967168 }
  0x35   :  { %361 = dma.done.wait [#allocation6], 4352  }
  0x36   :  { %362 = vsyncadd [#allocation6], 4294962944  ;;  %v76_v0 = vld [vmem:[#allocation7 + $0x80] sm:$0xff]  ;;  %v77_v1 = vld [vmem:[#allocation7 + $0x88] sm:$0xff]  ;;  %s370_s30 = smov [#allocation8]  }
  0x37   :  { %v60_v2 = vld [vmem:[#allocation7] sm:$0xff]  ;;  %v233_v3 = vpack.c.bf16 %v77_v1, %v76_v0  ;;  %v61_v4 = vld [vmem:[#allocation7 + $0x8] sm:$0xff]  ;;  %v78_v5 = vld [vmem:[#allocation7 + $0x90] sm:$0xff]  ;;  %s185_s5 = sshll.u32 %s370_s30, 4  ;;  %s186_s5 = int_to_ptr.vmem [resolvable:$true] %s185_s5 }
  0x38   :  { %v79_v6 = vld [vmem:[#allocation7 + $0x98] sm:$0xff]  ;;  %v235_v7 = vpack.c.bf16 %v61_v4, %v60_v2  ;;  %v62_v9 = vld [vmem:[#allocation7 + $0x10] sm:$0xff]  ;;  %v80_v11 = vld [vmem:[#allocation7 + $0xa0] sm:$0xff]  ;;  %s337_s6 = scalar_lea.vmem %s186_s5, 128  ;;  %p342_p11 = scmp.lt.s32.totalorder %s186_s5, %s186_s5 }
  0x39   :  { %v237_v8 = vpack.c.bf16 %v79_v6, %v78_v5  ;;  %v63_v10 = vld [vmem:[#allocation7 + $0x18] sm:$0xff]  ;;  %234 = vmatprep.subr.bf16.mxu0 %v233_v3  ;;  %v81_v12 = vld [vmem:[#allocation7 + $0xa8] sm:$0xff]  ;;  %v64_v15 = vld [vmem:[#allocation7 + $0x20] sm:$0xff]  ;;  %p338_p10 = scmp.ne.s32.totalorder %s186_s5, %s337_s6  ;;  %p343_p12 = scmp.lt.s32.totalorder %s337_s6, %s337_s6 }
  0x3a   :  { %236 = vmatpush3.bf16.msra.mxu0 %v235_v7  ;;  %v239_v13 = vpack.c.bf16 %v63_v10, %v62_v9  ;;  %v241_v14 = vpack.c.bf16 %v81_v12, %v80_v11  ;;  %v65_v16 = vld [vmem:[#allocation7 + $0x28] sm:$0xff]  ;;  %v82_v17 = vld [vmem:[#allocation7 + $0xb0] sm:$0xff]  ;;  %v83_v18 = vld [vmem:[#allocation7 + $0xb8] sm:$0xff] }
  0x3b   :  { %238 = vmatprep.subr.bf16.mxu0 %v237_v8  ;;  %v243_v19 = vpack.c.bf16 %v65_v16, %v64_v15  ;;  %v245_v20 = vpack.c.bf16 %v83_v18, %v82_v17  ;;  %v66_v21 = vld [vmem:[#allocation7 + $0x30] sm:$0xff]  ;;  %v67_v22 = vld [vmem:[#allocation7 + $0x38] sm:$0xff]  ;;  %v84_v23 = vld [vmem:[#allocation7 + $0xc0] sm:$0xff]  ;;  %p344_p13 = por %p343_p12, %p342_p11 }
  0x3c   :  { %v85_v24 = vld [vmem:[#allocation7 + $0xc8] sm:$0xff]  ;;  %v59_v25 = vld [vmem:[#allocation5 + $0x8] sm:$0xff]  ;;  %v247_v26 = vpack.c.bf16 %v67_v22, %v66_v21  ;;  %v68_v28 = vld [vmem:[#allocation7 + $0x40] sm:$0xff] }
  0x3d   :  { %160 = vmatprep.mubr.f32.mxu0 %v59_v25  ;;  %v249_v27 = vpack.c.bf16 %v85_v24, %v84_v23  ;;  %v69_v29 = vld [vmem:[#allocation7 + $0x48] sm:$0xff]  ;;  %v86_v30 = vld [vmem:[#allocation7 + $0xd0] sm:$0xff]  ;;  %v87_v31 = vld [vmem:[#allocation7 + $0xd8] sm:$0xff]  ;;  %p345_p0 = pnand %p344_p13, %p338_p10 }
  0x3e   :  { %240 = vmatpush3.bf16.msra.mxu0 %v239_v13  ;;  %v251_v32 = vpack.c.bf16 %v69_v29, %v68_v28  ;;  %v253_v33 = vpack.c.bf16 %v87_v31, %v86_v30  ;;  %v70_v34 = vld [vmem:[#allocation7 + $0x50] sm:$0xff]  ;;  %v71_v35 = vld [vmem:[#allocation7 + $0x58] sm:$0xff]  ;;  %v88_v36 = vld [vmem:[#allocation7 + $0xe0] sm:$0xff] }
  0x3f   :  { %242 = vmatprep.subr.bf16.mxu0 %v241_v14  ;;  %v89_v37 = vld [vmem:[#allocation7 + $0xe8] sm:$0xff]  ;;  %v255_v38 = vpack.c.bf16 %v71_v35, %v70_v34  ;;  %v72_v40 = vld [vmem:[#allocation7 + $0x60] sm:$0xff]  ;;  %v90_v42 = vld [vmem:[#allocation7 + $0xf0] sm:$0xff] }
  0x40   :  { %v257_v39 = vpack.c.bf16 %v89_v37, %v88_v36  ;;  %v73_v41 = vld [vmem:[#allocation7 + $0x68] sm:$0xff]  ;;  %v91_v43 = vld [vmem:[#allocation7 + $0xf8] sm:$0xff]  ;;  %v74_v46 = vld [vmem:[#allocation7 + $0x70] sm:$0xff] }
  0x41   :  { %v259_v44 = vpack.c.bf16 %v73_v41, %v72_v40  ;;  %v261_v45 = vpack.c.bf16 %v91_v43, %v90_v42  ;;  %v75_v47 = vld [vmem:[#allocation7 + $0x78] sm:$0xff]  ;;  %v58_v49 = vld [vmem:[#allocation5] sm:$0xff]  ;;  %v196_v50 = vld [vmem:[%s455_s2] ss:$0 sm:$0xff] }
  0x42   :  { %244 = vmatpush3.bf16.msra.mxu0 %v243_v19  ;;  %v263_v48 = vpack.c.bf16 %v75_v47, %v74_v46  ;;  %v166_v51 = vld [vmem:[#allocation2] sm:$0xff] }
  0x43   :  { %246 = vmatprep.subr.bf16.mxu0 %v245_v20  ;;  %v171_v52 = vmul.f32 %v196_v50, %v166_v51  ;;  %v197_v53 = vld [vmem:[%s455_s2 + $0x1] ss:$0 sm:$0xff]  ;;  %v195_v55 = vld [vmem:[%s455_s2 + $0x2] ss:$0 sm:$0xff] }
  0x45   :  { %v176_v58 = vadd.f32 %v197_v53, %v171_v52 }
  0x46   :  { %248 = vmatpush3.bf16.msra.mxu0 %v247_v26 }
  0x47   :  { %250 = vmatprep.subr.bf16.mxu0 %v249_v27 }
  0x4a   :  { %252 = vmatpush3.bf16.msra.mxu0 %v251_v32 }
  0x4b   :  { %254 = vmatprep.subr.bf16.mxu0 %v253_v33 }
  0x4e   :  { %256 = vmatpush3.bf16.msra.mxu0 %v255_v38 }
  0x4f   :  { %258 = vmatprep.subr.bf16.mxu0 %v257_v39 }
  0x52   :  { %260 = vmatpush3.bf16.msra.mxu0 %v259_v44 }
  0x53   :  { %262 = vmatprep.subr.bf16.mxu0 %v261_v45 }
  0x56   :  { %264 = vmatpush3.bf16.msra.mxu0 %v263_v48 }
  0x59   :  { %161 = vmatmul.mubr.f32.vlgmr.msra.gmra.mrb[0].mxu0 %v58_v49 }
 0x12c   :  { %v230_v54 = vpop.f32.mrb[0].mxu0 }
 0x12d   :  { %v231_v56 = vpop.f32.mrb[1].mxu0 }
 0x12e   :  { %v232_v57 = vadd.f32 %v231_v56, %v230_v54 }
 0x130   :  { %v163_v59 = vadd.f32 %v232_v57, %v195_v55 }
 0x132   :  { %v177_v60 = vmul.f32 %v176_v58, %v163_v59 }
 0x134   :  { %178 = vst [vmem:[#allocation8] sm:$0xff] %v177_v60 }
 0x135   :  { %348 = shalt.err (!%p345_p0)
}
 0x136   :  { %s349_s2 = scalar_lea.hbm %s457_s4, 128 }
 0x137   :  { %p350_p1 = scmp.ne.s32.totalorder %s457_s4, %s349_s2  ;;  %p353_p2 = scmp.lt.u32.totalorder %s349_s2, %s457_s4 }
 0x139   :  { %p355_p3 = pnand %p353_p2, %p350_p1 }
 0x13b   :  { %358 = shalt.err (!%p355_p3)
}
 0x13c   :  { %188 = dma.vmem_to_hbm [thread:$0]  %s186_s5, 128, %s457_s4, [#allocation4]  }
 0x13d   :  { %363 = dma.done.wait [#allocation4], 128  }
 0x13e   :  { %364 = vsyncadd [#allocation4], 4294967168 }
 0x13f   :  { %192 = vsyncpa [#allocation3], 1 }
 0x140   :  { %193 = vsyncpa [#allocation6], 1 }
 0x141   :  { %194 = vsyncpa [#allocation4], 1 }

</bundles_post_ra>
